<compile_context>
chip_gen: v7x
topology: tpu7x:2x2x1
jax: 0.10.0
libtpu: 0.0.40
codegen_flags: <defaults>
</compile_context>

<pallas_src>
import jax
import jax.numpy as jnp
from jax.experimental import pallas as pl
from jax.experimental.pallas import tpu as pltpu

B, S, H, C = 2, 8, 32, 32      # batch, seq len, bert hidden size, compression dim
VOCAB = 64


def colberter_kernel(q_len_ref, d_len_ref,          # scalar prefetch (SMEM)
                     x_ref, w_ref, b_ref, merge_ref,  # inputs
                     out_ref):                        # output (1, 1, 3)
    s = x_ref.shape[1] // 2                 # sequence length
    c = (w_ref.shape[1] - 1) // 2           # compression dim
    b = pl.program_id(0)

    q_len = q_len_ref[b]
    d_len = d_len_ref[b]

    # --- one fused MXU matmul: [q_hidden; d_hidden] @ [w_cls | w_cmp | w_eff] ---
    xb = x_ref[0]                                                  # (2S, H) bf16
    y = jnp.dot(xb, w_ref[...],
                preferred_element_type=jnp.float32) + b_ref[...]   # (2S, 2C+1) f32

    q_cls = y[0:1, 0:c]                     # (1, C)  cls compression of query token 0
    d_cls = y[s:s + 1, 0:c]                 # (1, C)  cls compression of doc token 0
    q_tok = y[0:s, c:2 * c]                 # (S, C)  query token compression
    d_tok = y[s:2 * s, c:2 * c]             # (S, C)  doc token compression
    d_imp = jnp.maximum(y[s:2 * s, 2 * c:2 * c + 1], 0.0)   # (S, 1) relu(reducer)

    # --- masks rebuilt from lengths (no VMEM mask tensors) ----------------------
    row_ids = jax.lax.broadcasted_iota(jnp.int32, (s, 1), 0)
    q_valid = row_ids < q_len                                   # (S, 1) bool
    d_valid = row_ids < d_len                                   # (S, 1) bool

    # doc tokens: importance scaling + padding mask
    d_tok = d_tok * (d_imp * d_valid.astype(jnp.float32))
    # NOTE: query-token masking (q_tok * q_mask) is skipped: masked query rows
    # are zeroed after the row-max below, so it cannot affect any output.

    # --- ColBERT max-sim term score (one lane-dense dot per batch element) -----
    sim = jnp.einsum('qc,kc->qk',
                     q_tok.astype(jnp.bfloat16), d_tok.astype(jnp.bfloat16),
                     preferred_element_type=jnp.float32)        # (S, S) f32
    col_ids = jax.lax.broadcasted_iota(jnp.int32, (s, s), 1)
    sim = jnp.where(col_ids < d_len, sim, -1000.0)              # same sentinel as torch
    term = jnp.max(sim, axis=-1, keepdims=True)                 # (S, 1)
    term = jnp.where(q_valid, term, 0.0)
    term_score = jnp.sum(term, axis=0, keepdims=True)           # (1, 1)

    # --- cls score --------------------------------------------------------------
    cls_score = jnp.sum(q_cls * d_cls, axis=-1, keepdims=True)  # (1, 1)

    # --- merge (sigmoid(score_merger) precomputed on host, read from SMEM) -----
    wgt = merge_ref[0, 0]
    cls_w = cls_score * wgt
    term_w = term_score * (1.0 - wgt)
    score = cls_w + term_w

    # single consolidated output row: [score, cls_w, term_w]
    lane = jax.lax.broadcasted_iota(jnp.int32, (1, 3), 1)
    row = jnp.where(lane == 0, score, jnp.where(lane == 1, cls_w, term_w))   # (1, 3)
    out_ref[...] = row.reshape(1, 1, 3)


def colberter_forward(params, q_hidden, q_len, d_hidden, d_len):
    """Returns (score, cls_score, term_score), each shape (B,), matching torch."""
    b_, s_, h_ = q_hidden.shape
    c_ = params["w_cmp"].shape[1]
    wc = 2 * c_ + 1

    # One-time (f32) parameter folding on host:
    #   stopword reducer folded into the compressor as an extra output column.
    w_eff = params["w_cmp"] @ params["w_red"].T                          # (H, 1)
    b_eff = params["b_cmp"] @ params["w_red"].T + params["b_red"]        # (1, 1)
    w_big = jnp.concatenate([params["w_cls"], params["w_cmp"], w_eff],
                            axis=1).astype(jnp.bfloat16)                 # (H, 2C+1)
    b_big = jnp.concatenate([params["b_cls"], params["b_cmp"], b_eff],
                            axis=1).astype(jnp.float32)                  # (1, 2C+1)
    merge_w = jax.nn.sigmoid(params["merger"]).astype(jnp.float32)       # (1, 1)

    # Stack query/doc hidden states wrapper-side (no in-kernel reshapes) and
    # cast to bf16 for the MXU; accumulation stays f32 inside the kernel.
    x = jnp.concatenate([q_hidden, d_hidden], axis=1).astype(jnp.bfloat16)  # (B, 2S, H)

    out = pl.pallas_call(
        colberter_kernel,
        out_shape=jax.ShapeDtypeStruct((b_, 1, 3), jnp.float32),
        grid_spec=pltpu.PrefetchScalarGridSpec(
            num_scalar_prefetch=2,                  # q_len, d_len -> SMEM
            grid=(b_,),
            in_specs=[
                pl.BlockSpec((1, 2 * s_, h_), lambda b, ql, dl: (b, 0, 0)),   # hidden
                pl.BlockSpec((h_, wc), lambda b, ql, dl: (0, 0)),             # fused W
                pl.BlockSpec((1, wc), lambda b, ql, dl: (0, 0)),              # fused bias
                pl.BlockSpec(memory_space=pltpu.MemorySpace.SMEM),            # merge wgt
            ],
            out_specs=pl.BlockSpec((1, 1, 3), lambda b, ql, dl: (b, 0, 0)),
        ),
        compiler_params=pltpu.CompilerParams(
            dimension_semantics=("parallel",),       # megacore batch sharding (v7x)
            # Safe everywhere (<= v7x's 64 MiB physical VMEM); production shapes
            # should re-derive batch/seq tiles against this budget.
            vmem_limit_bytes=32 * 1024 * 1024,
        ),
    )(q_len.astype(jnp.int32), d_len.astype(jnp.int32), x, w_big, b_big, merge_w)

    return out[:, 0, 0], out[:, 0, 1], out[:, 0, 2]


def reference_forward(params, q_hidden, q_len, d_hidden, d_len):
    """Pure-jnp (f32) mirror of the PyTorch module, for correctness checking."""
    s_ = q_hidden.shape[1]
    q_mask = (jnp.arange(s_)[None, :] < q_len[:, None]).astype(jnp.float32)
    d_mask = (jnp.arange(s_)[None, :] < d_len[:, None]).astype(jnp.float32)

    def compress(h):
        cls_v = h[:, 0, :] @ params["w_cls"] + params["b_cls"]
        tok = jnp.einsum('bsh,hc->bsc', h, params["w_cmp"]) + params["b_cmp"]
        return cls_v, tok

    q_cls, q_tok = compress(q_hidden)
    q_tok = q_tok * q_mask[..., None]
    d_cls, d_tok = compress(d_hidden)
    imp = jax.nn.relu(jnp.sum(d_tok * params["w_red"], axis=-1, keepdims=True)
                      + params["b_red"])
    d_tok = d_tok * imp * d_mask[..., None]

    cls_score = jnp.sum(q_cls * d_cls, axis=1)
    s = jnp.einsum('bqc,bkc->bqk', q_tok, d_tok)
    s = jnp.where(d_mask[:, None, :] > 0, s, -1000.0)
    term = jnp.where(q_mask > 0, jnp.max(s, axis=-1), 0.0)
    term_score = jnp.sum(term, axis=-1)

    w = jax.nn.sigmoid(params["merger"][0, 0])
    cls_score = cls_score * w
    term_score = term_score * (1.0 - w)
    return cls_score + term_score, cls_score, term_score


if __name__ == "__main__":
    key = jax.random.PRNGKey(0)
    k_emb, k_qid, k_did, k1, k2, k3, k4, k5 = jax.random.split(key, 8)

    # Deterministic module parameters (shapes from ColBERTer.__init__).
    params = {
        "w_cls": jax.random.normal(k1, (H, C), jnp.float32) * 0.05,   # cls_compressor
        "b_cls": jax.random.normal(k2, (1, C), jnp.float32) * 0.05,
        "w_cmp": jax.random.normal(k3, (H, C), jnp.float32) * 0.05,   # compressor
        "b_cmp": jax.random.normal(k4, (1, C), jnp.float32) * 0.05,
        "w_red": jax.random.normal(k5, (1, C), jnp.float32) * 0.05,   # stopword_reducer.weight
        "b_red": jnp.ones((1, 1), jnp.float32),                       # stopword_reducer.bias = 1
        "merger": jnp.zeros((1, 1), jnp.float32),                     # score_merger = 0
    }

    # Synthetic "BERT": deterministic embedding lookup over input_ids.
    emb_table = jax.random.normal(k_emb, (VOCAB, H), jnp.float32) * 0.1
    q_ids = jax.random.randint(k_qid, (B, S), 0, VOCAB)
    d_ids = jax.random.randint(k_did, (B, S), 0, VOCAB)
    q_hidden = emb_table[q_ids]                                       # (B, S, H)
    d_hidden = emb_table[d_ids]                                       # (B, S, H)

    # attention masks as prefix lengths (standard padding masks).
    q_len = jnp.array([6, 8], jnp.int32)
    d_len = jnp.array([8, 5], jnp.int32)

    score, cls_s, term_s = colberter_forward(params, q_hidden, q_len, d_hidden, d_len)
    jax.block_until_ready((score, cls_s, term_s))

    ref_score, ref_cls, ref_term = reference_forward(params, q_hidden, q_len, d_hidden, d_len)
    # bf16 MXU inputs with f32 accumulation -> compare against the f32 reference
    # with a bf16-appropriate tolerance.
    assert jnp.allclose(score, ref_score, rtol=2e-2, atol=2e-2), (score, ref_score)
    assert jnp.allclose(cls_s, ref_cls, rtol=2e-2, atol=2e-2), (cls_s, ref_cls)
    assert jnp.allclose(term_s, ref_term, rtol=2e-2, atol=2e-2), (term_s, ref_term)

    print("KERNEL_OK")
</pallas_src>

<mosaic_0001>
module attributes {stable_mosaic.version = 11 : i64} {
  func.func @colberter_kernel(%arg0: i32, %arg1: memref<2xi32, #tpu.memory_space<smem>>, %arg2: memref<2xi32, #tpu.memory_space<smem>>, %arg3: memref<1x16x32xbf16, #tpu.memory_space<vmem>>, %arg4: memref<32x65xbf16, #tpu.memory_space<vmem>>, %arg5: memref<1x65xf32, #tpu.memory_space<vmem>>, %arg6: memref<1x1xf32, #tpu.memory_space<smem>>, %arg7: memref<1x1x3xf32, #tpu.memory_space<vmem>>) attributes {dimension_semantics = [#tpu.dimension_semantics<parallel>], iteration_bounds = array<i64: 2>, scalar_prefetch = 2 : i64, scratch_operands = 0 : i64, tpu.core_type = #tpu.core_type<tc>, window_params = [{transform_indices = @transform_0, window_bounds = array<i64: 1, 16, 32>}, {pipeline_mode = #tpu.pipeline_mode<synchronous>, transform_indices = @transform_1, window_bounds = array<i64: 32, 65>}, {pipeline_mode = #tpu.pipeline_mode<synchronous>, transform_indices = @transform_2, window_bounds = array<i64: 1, 65>}, {transform_indices = @transform_3, window_bounds = array<i64: 1, 1>}, {transform_indices = @transform_4, window_bounds = array<i64: 1, 1, 3>}]} {
    %0 = arith.index_cast %arg0 : i32 to index
    %1 = memref.load %arg1[%0] : memref<2xi32, #tpu.memory_space<smem>>
    %2 = arith.index_cast %arg0 : i32 to index
    %3 = memref.load %arg2[%2] : memref<2xi32, #tpu.memory_space<smem>>
    %c0 = arith.constant 0 : index
    %c0_0 = arith.constant 0 : index
    %c0_1 = arith.constant 0 : index
    %4 = vector.load %arg3[%c0, %c0_0, %c0_1] : memref<1x16x32xbf16, #tpu.memory_space<vmem>>, vector<1x16x32xbf16>
    %5 = vector.shape_cast %4 : vector<1x16x32xbf16> to vector<16x32xbf16>
    %c0_2 = arith.constant 0 : index
    %c0_3 = arith.constant 0 : index
    %6 = vector.load %arg4[%c0_2, %c0_3] : memref<32x65xbf16, #tpu.memory_space<vmem>>, vector<32x65xbf16>
    %cst = arith.constant dense<0.000000e+00> : vector<16x65xf32>
    %7 = tpu.matmul %5, %6, %cst {dimension_numbers = #tpu.dot_dimension_numbers<[1], [0], [0], [1], [0, 0, 1, 1], [], []>} : vector<16x32xbf16>, vector<32x65xbf16>, vector<16x65xf32> -> vector<16x65xf32>
    %c0_4 = arith.constant 0 : index
    %c0_5 = arith.constant 0 : index
    %8 = vector.load %arg5[%c0_4, %c0_5] : memref<1x65xf32, #tpu.memory_space<vmem>>, vector<1x65xf32>
    %9 = vector.broadcast %8 : vector<1x65xf32> to vector<16x65xf32>
    %10 = arith.addf %7, %9 : vector<16x65xf32>
    %11 = vector.extract_strided_slice %10 {offsets = [0, 0], sizes = [1, 32], strides = [1, 1]} : vector<16x65xf32> to vector<1x32xf32>
    %12 = vector.extract_strided_slice %10 {offsets = [8, 0], sizes = [1, 32], strides = [1, 1]} : vector<16x65xf32> to vector<1x32xf32>
    %13 = vector.extract_strided_slice %10 {offsets = [0, 32], sizes = [8, 32], strides = [1, 1]} : vector<16x65xf32> to vector<8x32xf32>
    %14 = vector.extract_strided_slice %10 {offsets = [8, 32], sizes = [8, 32], strides = [1, 1]} : vector<16x65xf32> to vector<8x32xf32>
    %15 = vector.extract_strided_slice %10 {offsets = [8, 64], sizes = [8, 1], strides = [1, 1]} : vector<16x65xf32> to vector<8x1xf32>
    %cst_6 = arith.constant 0.000000e+00 : f32
    %16 = vector.broadcast %cst_6 : f32 to vector<8x1xf32>
    %17 = arith.maximumf %15, %16 : vector<8x1xf32>
    %18 = tpu.iota {dimensions = array<i32: 0>} : vector<8x1xi32>
    %19 = vector.broadcast %1 : i32 to vector<8x1xi32>
    %20 = arith.cmpi slt, %18, %19 : vector<8x1xi32>
    %21 = vector.broadcast %3 : i32 to vector<8x1xi32>
    %22 = arith.cmpi slt, %18, %21 : vector<8x1xi32>
    %23 = arith.extui %22 : vector<8x1xi1> to vector<8x1xi32>
    %24 = arith.sitofp %23 : vector<8x1xi32> to vector<8x1xf32>
    %25 = arith.mulf %17, %24 : vector<8x1xf32>
    %26 = vector.broadcast %25 : vector<8x1xf32> to vector<8x32xf32>
    %27 = arith.mulf %14, %26 : vector<8x32xf32>
    %28 = arith.truncf %13 : vector<8x32xf32> to vector<8x32xbf16>
    %29 = arith.truncf %27 : vector<8x32xf32> to vector<8x32xbf16>
    "tpu.trace_start"() <{level = 10 : i32, message = "qc,kc->qk"}> : () -> ()
    %cst_7 = arith.constant dense<0.000000e+00> : vector<8x8xf32>
    %30 = tpu.matmul %28, %29, %cst_7 {dimension_numbers = #tpu.dot_dimension_numbers<[1], [1], [0], [0], [0, 0, 1, 0], [], []>} : vector<8x32xbf16>, vector<8x32xbf16>, vector<8x8xf32> -> vector<8x8xf32>
    "tpu.trace_stop"() : () -> ()
    %31 = tpu.iota {dimensions = array<i32: 1>} : vector<8x8xi32>
    %32 = vector.broadcast %3 : i32 to vector<8x8xi32>
    %33 = arith.cmpi slt, %31, %32 : vector<8x8xi32>
    %cst_8 = arith.constant -1.000000e+03 : f32
    %34 = vector.broadcast %cst_8 : f32 to vector<8x8xf32>
    %35 = arith.select %33, %30, %34 : vector<8x8xi1>, vector<8x8xf32>
    %cst_9 = arith.constant dense<0xFF800000> : vector<8xf32>
    %36 = vector.multi_reduction <maximumf>, %35, %cst_9 [1] : vector<8x8xf32> to vector<8xf32>
    %37 = vector.shape_cast %36 : vector<8xf32> to vector<8x1xf32>
    %cst_10 = arith.constant 0.000000e+00 : f32
    %38 = vector.broadcast %cst_10 : f32 to vector<8x1xf32>
    %39 = arith.select %20, %37, %38 : vector<8x1xi1>, vector<8x1xf32>
    %cst_11 = arith.constant dense<0.000000e+00> : vector<1xf32>
    %40 = vector.multi_reduction <add>, %39, %cst_11 [0] : vector<8x1xf32> to vector<1xf32>
    %41 = vector.shape_cast %40 : vector<1xf32> to vector<1x1xf32>
    %42 = arith.mulf %11, %12 : vector<1x32xf32>
    %cst_12 = arith.constant dense<0.000000e+00> : vector<1xf32>
    %43 = vector.multi_reduction <add>, %42, %cst_12 [1] : vector<1x32xf32> to vector<1xf32>
    %44 = vector.shape_cast %43 : vector<1xf32> to vector<1x1xf32>
    %c0_13 = arith.constant 0 : index
    %c0_14 = arith.constant 0 : index
    %45 = memref.load %arg6[%c0_13, %c0_14] : memref<1x1xf32, #tpu.memory_space<smem>>
    %46 = vector.broadcast %45 : f32 to vector<1x1xf32>
    %47 = arith.mulf %44, %46 : vector<1x1xf32>
    %cst_15 = arith.constant 1.000000e+00 : f32
    %48 = arith.subf %cst_15, %45 : f32
    %49 = vector.broadcast %48 : f32 to vector<1x1xf32>
    %50 = arith.mulf %41, %49 : vector<1x1xf32>
    %51 = arith.addf %47, %50 : vector<1x1xf32>
    %52 = tpu.iota {dimensions = array<i32: 1>} : vector<1x3xi32>
    %c0_i32 = arith.constant 0 : i32
    %53 = vector.broadcast %c0_i32 : i32 to vector<1x3xi32>
    %54 = arith.cmpi eq, %52, %53 : vector<1x3xi32>
    %c1_i32 = arith.constant 1 : i32
    %55 = vector.broadcast %c1_i32 : i32 to vector<1x3xi32>
    %56 = arith.cmpi eq, %52, %55 : vector<1x3xi32>
    %57 = vector.shape_cast %47 : vector<1x1xf32> to vector<1x1xf32>
    %58 = vector.broadcast %57 : vector<1x1xf32> to vector<1x3xf32>
    %59 = vector.shape_cast %50 : vector<1x1xf32> to vector<1x1xf32>
    %60 = vector.broadcast %59 : vector<1x1xf32> to vector<1x3xf32>
    %61 = arith.select %56, %58, %60 : vector<1x3xi1>, vector<1x3xf32>
    %62 = vector.shape_cast %51 : vector<1x1xf32> to vector<1x1xf32>
    %63 = vector.broadcast %62 : vector<1x1xf32> to vector<1x3xf32>
    %64 = arith.select %54, %63, %61 : vector<1x3xi1>, vector<1x3xf32>
    %65 = vector.shape_cast %64 : vector<1x3xf32> to vector<1x1x3xf32>
    %c0_16 = arith.constant 0 : index
    %c0_17 = arith.constant 0 : index
    %c0_18 = arith.constant 0 : index
    %66 = vector.load %arg7[%c0_16, %c0_17, %c0_18] : memref<1x1x3xf32, #tpu.memory_space<vmem>>, vector<1x1x3xf32>
    tpu.vector_store %arg7[%c0_16, %c0_17, %c0_18], %65 {strides = array<i32>} : memref<1x1x3xf32, #tpu.memory_space<vmem>>, vector<1x1x3xf32>,
    return
  }
  func.func @transform_0(%arg0: i32, %arg1: memref<2xi32, #tpu.memory_space<smem>>, %arg2: memref<2xi32, #tpu.memory_space<smem>>) -> (i32, i32, i32) {
    %c0_i32 = arith.constant 0 : i32
    %c0_i32_0 = arith.constant 0 : i32
    %c0_i32_1 = arith.constant 0 : i32
    return %arg0, %c0_i32, %c0_i32_0 : i32, i32, i32
  }
  func.func @transform_1(%arg0: i32, %arg1: memref<2xi32, #tpu.memory_space<smem>>, %arg2: memref<2xi32, #tpu.memory_space<smem>>) -> (i32, i32) {
    %c0_i32 = arith.constant 0 : i32
    %c0_i32_0 = arith.constant 0 : i32
    %c0_i32_1 = arith.constant 0 : i32
    return %c0_i32, %c0_i32_0 : i32, i32
  }
  func.func @transform_2(%arg0: i32, %arg1: memref<2xi32, #tpu.memory_space<smem>>, %arg2: memref<2xi32, #tpu.memory_space<smem>>) -> (i32, i32) {
    %c0_i32 = arith.constant 0 : i32
    %c0_i32_0 = arith.constant 0 : i32
    %c0_i32_1 = arith.constant 0 : i32
    return %c0_i32, %c0_i32_0 : i32, i32
  }
  func.func @transform_3(%arg0: i32, %arg1: memref<2xi32, #tpu.memory_space<smem>>, %arg2: memref<2xi32, #tpu.memory_space<smem>>) -> (i32, i32) {
    %c0_i32 = arith.constant 0 : i32
    %c0_i32_0 = arith.constant 0 : i32
    %c0_i32_1 = arith.constant 0 : i32
    return %c0_i32, %c0_i32_0 : i32, i32
  }
  func.func @transform_4(%arg0: i32, %arg1: memref<2xi32, #tpu.memory_space<smem>>, %arg2: memref<2xi32, #tpu.memory_space<smem>>) -> (i32, i32, i32) {
    %c0_i32 = arith.constant 0 : i32
    %c0_i32_0 = arith.constant 0 : i32
    %c0_i32_1 = arith.constant 0 : i32
    return %arg0, %c0_i32, %c0_i32_0 : i32, i32, i32
  }
}

</mosaic_0001>

<bundles_post_ra>
// kernel: tpu_custom_call.1
= control target key start
LH: loop header
LB: loop body
LE: loop exit
PB: predicated region body
PF: predicated region fallthrough
CT: control target
= control target key end

     0   :  { %s1050_s0 = inlined_call_operand.vmem [shape: s32[2], index: 0, kind: input, shape index: {}]   ;;  %s1051_s2 = inlined_call_operand.hbm [shape: bf16[2,16,32], index: 2, kind: input, shape index: {}]   ;;  %s1052_s3 = inlined_call_operand.hbm [shape: bf16[32,65], index: 3, kind: input, shape index: {}]   ;;  %s1053_s4 = inlined_call_operand.vmem [shape: f32[1,65], index: 4, kind: input, shape index: {}]   ;;  %s1054_s6 = inlined_call_operand.hbm [shape: f32[2,1,3], index: 6, kind: output, shape index: {}]   ;;  %s1055_s1 = inlined_call_operand.vmem [shape: s32[2], index: 1, kind: input, shape index: {}]   ;;  %s1056_s5 = inlined_call_operand.<no memory space> [shape: f32[1,1], index: 5, kind: input, shape index: {}]  }
   0x1   :  { %s11_s23 = sshll.u32 %s1050_s0, 4  ;;  %s15_s26 = sshll.u32 %s1055_s1, 4  ;;  %s12_s23 = int_to_ptr.vmem [resolvable:$true] %s11_s23  ;;  %s16_s26 = int_to_ptr.vmem [resolvable:$true] %s15_s26 }
   0x2   :  { %s622_s27 = scalar_lea.vmem %s12_s23, 16  ;;  %p627_p1 = scmp.lt.s32.totalorder %s12_s23, %s12_s23 }
   0x3   :  { %p623_p0 = scmp.ne.s32.totalorder %s12_s23, %s622_s27  ;;  %p628_p2 = scmp.lt.s32.totalorder %s622_s27, %s622_s27 }
   0x5   :  { %p629_p3 = por %p628_p2, %p627_p1 }
   0x7   :  { %p630_p4 = pnand %p629_p3, %p623_p0 }
   0x9   :  { %633 = shalt.err (!%p630_p4)  }
   0xa   :  { %s778_s28 = smov [#allocation3]   ;;  %s634_s29 = scalar_lea.vmem %s16_s26, 16 }
   0xb   :  { %14 = dma.vmem_to_smem %s12_s23, 16, %s778_s28, [#allocation2] }
   0xc   :  { %p635_p5 = scmp.ne.s32.totalorder %s16_s26, %s634_s29  ;;  %p639_p6 = scmp.lt.s32.totalorder %s16_s26, %s16_s26 }
   0xd   :  { %p640_p7 = scmp.lt.s32.totalorder %s634_s29, %s634_s29 }
   0xf   :  { %p641_p8 = por %p640_p7, %p639_p6 }
  0x11   :  { %p642_p9 = pnand %p641_p8, %p635_p5 }
  0x13   :  { %645 = shalt.err (!%p642_p9)  }
  0x14   :  { %s779_s0 = smov [#allocation4]   ;;  %19 = sst [smem:[#allocation5]] %s1056_s5 }
  0x15   :  { %18 = dma.vmem_to_smem %s16_s26, 16, %s779_s0, [#allocation2] }
  0x16   :  { %748 = dma.done.wait [#allocation2], 32 }
  0x17   :  { %749 = vsyncadd [#allocation2], 4294967264 }
  0x18   :  { %21 = sfence }
  0x19   :  { %22 = vsyncpa [#allocation7], 0 }
  0x1a   :  { %24 = vsyncpa [#allocation7 + $0x1], 0 }
  0x1b   :  { %25 = vsyncpa [#allocation10], 0 }
  0x1c   :  { %26 = vsyncpa [#allocation8], 0 }
  0x1d   :  { %28 = vsyncpa [#allocation8 + $0x1], 0  ;;  %s833_s7 = smov 0   ;;  %s835_s8 = smov 0  }
  0x1e   :  { %s837_s9 = smov 0   ;;  %s839_s10 = smov 0  }
  0x1f LB: > { %s854_s5 = sadd.s32 4294967295, %s776_s10   ;;  %s513_s11 = sadd.s32 4294967294, %s776_s10   ;;  %s776_s10 = sphi %s839_s10, %s1076_s10   ;;  %s772_s9 = sphi %s837_s9, %s1075_s9   ;;  %s768_s8 = sphi %s835_s8, %s1074_s8   ;;  %s764_s7 = sphi %s833_s7, %s1073_s7  }
  0x20   : > { %p54_p10 = scmp.ne.s32.totalorder %s768_s8, %s764_s7  ;;  %p1057_p11 = scmp.eq.s32.totalorder %s854_s5, 0 }
  0x21   : > { %p147_p13 = scmp.eq.s32.totalorder %s513_s11, 1  ;;  %p514_p1 = scmp.ge.s32.totalorder %s776_s10, 1 }
  0x22   : > { %p863_p0 = por %p1057_p11, %p54_p10  ;;  %p154_p3 = scmp.lt.s32.totalorder %s776_s10, 3 }
  0x23   : > { %p868_p2 = por %p147_p13, %p54_p10  ;;  %s780_s15 = smov [#allocation9]  }
  0x24   : > { %s1060_s12 = scalar_select %p863_p0, 1, 0 }
  0x25   : > { %s1061_s13 = scalar_select %p868_p2, 1, 0 }
  0x26   : > { %p873_p4 = pnand %p514_p1, %p154_p3  ;;  %s166_s16 = sshll.u32 %s780_s15, 4  ;;  %s877_s16 = int_to_ptr.vmem [resolvable:$true] %s166_s16 }
  0x27   : > { %s889_s18 = sadd.s32 1, %s776_s10   ;;  %s41_s19 = sadd.s32 1, %s772_s9 }
  0x28   : > { %s1062_s14 = scalar_select %p873_p4, 1, 0 }
  0x29   : > { %p561_p5 = pneg %p873_p4  ;;  %s38_s20 = ssub.s32 %s776_s10, %s889_s18 }
  0x2a   : > { %s646_s23 = scalar_lea.hbm %s1052_s3, 256 }
  0x2b   : > { %p884_p7 = pnand %p561_p5, %p1057_p11  ;;  %p647_p8 = scmp.ne.s32.totalorder %s1052_s3, %s646_s23 }
  0x2c   : > { %p653_p1 = scmp.lt.u32.totalorder %s646_s23, %s1052_s3 }
  0x2d   : > { %p648_p9 = pneg %p884_p7 }
  0x2f   : > { %p649_p10 = pnand %p648_p9, %p647_p8 }
  0x31   : > { %p650_p13 = pneg %p649_p10 }
  0x33   : > { %p655_p3 = pnand %p653_p1, %p650_p13 }
  0x35   : > { %658 = shalt.err (!%p655_p3)
}
  0x36   : > { %s659_s28 = scalar_lea.vmem %s877_s16, 256  ;;  %p667_p12 = scmp.lt.s32.totalorder %s877_s16, %s877_s16 }
  0x37   : > { %p660_p5 = scmp.ne.s32.totalorder %s877_s16, %s659_s28  ;;  %p668_p2 = scmp.lt.s32.totalorder %s659_s28, %s659_s28 }
  0x39   : > { %p662_p6 = pnand %p660_p5, %p648_p9  ;;  %p669_p0 = por %p668_p2, %p667_p12 }
  0x3b   : > { %p663_p11 = pneg %p662_p6 }
  0x3d   : > { %p670_p4 = pnand %p669_p0, %p663_p11 }
  0x3f   : > { %673 = shalt.err (!%p670_p4)
}
  0x40   : > { %s781_s29 = smov 64   ;;  %s782_s0 = smov 4  }
  0x41   : > { %564 = dma.hbm_to_vmem [thread:$0]  (!%p884_p7), %s1052_s3, 256, %s877_s16, [#allocation10], %s781_s29, %s781_s29, %s782_s0  }
  0x42   : > { %p39_p11 = scmp.eq.s32.totalorder %s38_s20, 0  ;;  %p48_p12 = scmp.ne.s32.totalorder %s772_s9, %s768_s8 }
  0x43   : > { %p49_p0 = scmp.eq.s32.totalorder %s776_s10, 0  ;;  %p574_p2 = scmp.lt.s32.totalorder %s776_s10, 2 }
  0x44   : > { %s923_s11 = scalar_select %p39_p11, %s772_s9, %s41_s19  }
  0x45   : > { %p50_p4 = por %p49_p0, %p48_p12  ;;  %p1064_p6 = scmp.eq.s32.totalorder %s854_s5, 1 }
  0x46   : > { %s186_s17 = sand.u32 1, %s772_s9   ;;  %s533_s21 = sshll.u32 %s776_s10, 7 }
  0x47   : > { %p927_p8 = por %p1064_p6, %p48_p12  ;;  %s517_s22 = sshll.u32 %s186_s17, 3 }
  0x48   : > { %s936_s25 = scalar_lea.hbm %s1051_s2, %s533_s21  ;;  %s190_s16 = scalar_lea.vmem [#allocation6], %s517_s22 }
  0x49   : > { %s197_s19 = sshll.u32 %s190_s16, 4  ;;  %p938_p7 = pnand %p574_p2, %p50_p4  ;;  %s942_s19 = int_to_ptr.vmem [resolvable:$true] %s197_s19 }
  0x4a   : > { %s944_s26 = scalar_lea.sflag [#allocation7], %s186_s17  ;;  %s674_s27 = scalar_lea.hbm %s936_s25, 128 }
  0x4b   : > { %p675_p9 = scmp.ne.s32.totalorder %s936_s25, %s674_s27  ;;  %p676_p10 = pneg %p938_p7 }
  0x4c   : > { %s679_s30 = scalar_lea.hbm %s1051_s2, 256  ;;  %p680_p3 = scmp.lt.u32.totalorder %s936_s25, %s1051_s2 }
  0x4d   : > { %p677_p13 = pnand %p676_p10, %p675_p9  ;;  %p681_p5 = scmp.lt.u32.totalorder %s679_s30, %s674_s27 }
  0x4e   : > { %p683_p12 = scmp.lt.u32.totalorder %s674_s27, %s936_s25 }
  0x4f   : > { %p678_p1 = pneg %p677_p13  ;;  %p682_p11 = por %p681_p5, %p680_p3 }
  0x51   : > { %p684_p0 = por %p683_p12, %p682_p11 }
  0x53   : > { %p685_p2 = pnand %p684_p0, %p678_p1 }
  0x55   : > { %688 = shalt.err (!%p685_p2)
}
  0x56   : > { %s689_s17 = scalar_lea.vmem %s942_s19, 128  ;;  %s783_s23 = smov [#allocation6]  }
  0x57   : > { %p690_p4 = scmp.ne.s32.totalorder %s942_s19, %s689_s17  ;;  %s694_s24 = sshll.u32 %s783_s23, 4  ;;  %s695_s24 = int_to_ptr.vmem [resolvable:$false] %s694_s24 }
  0x58   : > { %s696_s16 = scalar_lea.vmem %s695_s24, 256  ;;  %p697_p13 = scmp.lt.s32.totalorder %s942_s19, %s695_s24 }
  0x59   : > { %p692_p6 = pnand %p690_p4, %p676_p10  ;;  %p698_p3 = scmp.lt.s32.totalorder %s696_s16, %s689_s17 }
  0x5b   : > { %p693_p9 = pneg %p692_p6  ;;  %p699_p5 = por %p698_p3, %p697_p13 }
  0x5d   : > { %p700_p11 = pnand %p699_p5, %p693_p9 }
  0x5f   : > { %703 = shalt.err (!%p700_p11)
}
  0x60   : > { %568 = dma.hbm_to_vmem [thread:$0]  (!%p938_p7), %s936_s25, 128, %s942_s19, %s944_s26, %s781_s29, %s781_s29, %s782_s0  }
  0x61   : > { %p1067_p10 = scmp.ne.s32.totalorder %s1062_s14, 0 }
  0x62   : > { %s978_s27 = sand.u32 (!%p1067_p10), 1, %s768_s8   ;;  %p1068_p1 = scmp.ne.s32.totalorder (!%p1067_p10), %s1060_s12, 0 }
  0x63   : > { %209 = sbr.rel (%p1067_p10) target bundleno = 983 (0x3d7), region = 36  ;;  %s521_s28 = sshll.u32 (!%p1067_p10), %s978_s27, 3 }
  0x64   : > { %s212_s1 = scalar_lea.sflag (!%p1067_p10), [#allocation7], %s978_s27  ;;  %s215_s30 = scalar_lea.vmem (!%p1067_p10), [#allocation6], %s521_s28 }
  0x6a   : > { %751 = dma.done.wait (%p1068_p1), %s212_s1, 128  }
  0x6b   : > { %753 = vsyncadd (%p1068_p1), %s212_s1, 4294967168  ;;  %p1069_p12 = scmp.eq.s32.totalorder %s854_s5, 0 }
  0x6d   : > { %755 = dma.done.wait (%p1069_p12), [#allocation10], 256   ;;  %p1070_p7 = pmov %p1069_p12 }
  0x6e   : > { %v784_v0 = vmov 0.0   ;;  %vm785_vm0 = vmmov 0   ;;  %v619_v1 = vld [vmem:[#allocation9] sm:$0xff]   ;;  %v620_v2 = vld [vmem:[#allocation9 + $0x8] sm:$0xff]   ;;  %v621_v3 = vld [vmem:[%s215_s30] sm:$0xff]   ;;  %vm276_vm1 = vcmask 261120   ;;  %v322_v5 = vlaneseq }
  0x6f   : > { %757 = vsyncadd (%p1070_p7), [#allocation10], 4294967040  ;;  %539 = vmatprep.subr.bf16.mxu0 %v784_v0  ;;  %543 = vmatprep.mubr.msk.bf16.mxu0 %vm785_vm0, %v784_v0  ;;  %v786_v4 = vmov 64   ;;  %s992_s12 = sld [smem:[#allocation4 + %s854_s5]]  ;;  %v523_v7 = vld [vmem:[%s1053_s4] ss:$0 sm:$0xff] }
  0x70   : > { %547 = vmatprep.subr.bf16.mxu1 %v784_v0  ;;  %549 = vmatprep.mubr.msk.bf16.mxu1 %vm785_vm0, %v784_v0  ;;  %v323_v6 = vshrl.u32 %v322_v5, 7  ;;  %s787_s0 = smov 96   ;;  %vm407_vm3 = vcmask 253952   ;;  %v392_v27 = vand.u32 127, %v322_v5  ;;  %vm395_vm5 = vcmask 64512   ;;  %s244_s25 = sld [smem:[#allocation3 + %s854_s5]] }
  0x71   : > { %540 = vmatpush3.bf16.msra.mxu0 %v619_v1  ;;  %618 = vset.pattern.permute.xlu0 %v786_v4  ;;  %s411_s19 = sld [smem:[#allocation5]]  ;;  %s530_s26 = sshll.u32 %s854_s5, 4  ;;  %vm422_vm9 = vcmask 16384  }
  0x72   : > { %541 = vmatprep.subr.bf16.mxu0 %v784_v0  ;;  %vm419_vm7 = vcmp.eq.s32.totalorder %v392_v27, 1  ;;  %s242_s21 = scalar_lea.vmem [#allocation11], %s978_s27  ;;  %vm418_vm8 = vcmp.eq.s32.totalorder %v392_v27, 0  ;;  %s1006_s24 = scalar_lea.hbm %s1054_s6, %s530_s26 }
  0x73   : > { %s437_s22 = sshll.u32 %s242_s21, 4  ;;  %s425_s16 = scalar_lea.sflag [#allocation8], %s978_s27  ;;  %s1008_s22 = int_to_ptr.vmem [resolvable:$true] %s437_s22 }
  0x74   : > { %s704_s5 = scalar_lea.vmem %s1008_s22, 16  ;;  %s788_s28 = smov [#allocation11]  }
  0x75   : > { %542 = vmatpush3.bf16.msra.mxu0 %v620_v2  ;;  %v326_v8 = vstv %s992_s12  ;;  %p705_p0 = scmp.ne.s32.totalorder %s1008_s22, %s704_s5  ;;  %s708_s1 = sshll.u32 %s788_s28, 4  ;;  %s709_s1 = int_to_ptr.vmem [resolvable:$false] %s708_s1 }
  0x76   : > { %vm327_vm2 = vcmp.lt.s32.totalorder %v323_v6, %v326_v8  ;;  %vm393_vm4 = vcmp.lt.s32.totalorder %v392_v27, %v326_v8  ;;  %v324_v34 = vstv %s244_s25  ;;  %s710_s30 = scalar_lea.vmem %s709_s1, 32  ;;  %p711_p6 = scmp.lt.s32.totalorder %s1008_s22, %s709_s1 }
  0x77   : > { %v528_v16 = vsel %vm327_vm2, 1.0, %v784_v0  ;;  %vm325_vm6 = vcmp.lt.s32.totalorder %v323_v6, %v324_v34  ;;  %s414_s20 = ssub.f32 1.0, %s411_s19  ;;  %v412_v42 = vstv %s411_s19  ;;  %p706_p2 = pnand %p705_p0, %p927_p8 }
  0x78   : > { %544 = vmatmul.mubr.msk.bf16.vlgmr.msra.gmra.mrb[0].mxu0 %vm276_vm1, %v621_v3  ;;  %p712_p9 = scmp.lt.s32.totalorder %s710_s30, %s704_s5 }
  0x79   : > { %v415_v44 = vstv %s414_s20  ;;  %p707_p4 = pneg %p706_p2 }
  0x7a   : > { %p713_p13 = por %p712_p9, %p711_p6 }
  0x7c   : > { %p714_p3 = pnand %p713_p13, %p707_p4 }
 0x14b   : > { %v314_v9 = vpop.f32.mrb[0].mxu0 }
 0x14c   : > { %v315_v10 = vadd.f32 %v523_v7, %v314_v9  ;;  %v545_v11 = vpop.f32.mrb[1].mxu0 }
 0x14d   : > { %v317_v12 = vpop.f32.mrb[2].mxu0 }
 0x14e   : > { %v318_v13 = vadd.f32 %v523_v7, %v317_v12  ;;  %v546_v14 = vpop.f32.mrb[3].mxu0  ;;  %v337_v15 = vpack.c.bf16 %v315_v10, %v315_v10 }
 0x150   : > { %340 = vrot.lane.b32.xlu1 %v337_v15, %s787_s0  ;;  %v321_v17 = vmax.f32 %v318_v13, 0.0  ;;  %v406_v22 = vmul.f32 %v318_v13, %v315_v10 }
 0x152   : > { %v330_v18 = vmul.f32 %v528_v16, %v321_v17  ;;  %v408_v23 = vsel %vm407_vm3, %v406_v22, 0.0 }
 0x154   : > { %333 = vperm.xlu0 %618, %v330_v18  }
 0x1c2   : > { %v341_v26 = vpop.permute.xlu1 %340 }
 0x1d3   : > { %v334_v19 = vpop.permute.xlu0 %333 }
 0x1d4   : > { %v336_v20 = vmul.f32 %v334_v19, %v318_v13 }
 0x1d6   : > { %v338_v21 = vpack.c.bf16 %v336_v20, %v336_v20 }
 0x1d8   : > { %343 = vrot.lane.b32.xlu0 %v338_v21, %s787_s0 }
 0x1f7   : > { %409 = vadd.xlane.f32.xlu0 %v408_v23 }
 0x24a   : > { %v344_v24 = vpop.permute.xlu0 %343 }
 0x24b   : > { %v349_v25 = vsel %vm276_vm1, %v344_v24, 0 }
 0x24c   : > { %548 = vmatpush3.bf16.xpose.msra.mxu1 %v349_v25 }
 0x253   : > { %550 = vmatmul.mubr.msk.bf16.vlgmr.msra.gmra.mrb[0].mxu1 %vm276_vm1, %v341_v26 }
 0x284   : > { %v410_v43 = vpop.xlane.xlu0 %409 }
 0x285   : > { %v413_v46 = vmul.f32 %v412_v42, %v410_v43 }
 0x326   : > { %v385_v28 = vpop.f32.mrb[0].mxu1 }
 0x327   : > { %v394_v29 = vsel %vm393_vm4, %v385_v28, -1000.0  ;;  %v551_v30 = vpop.f32.mrb[1].mxu1 }
 0x328   : > { %v388_v31 = vpop.f32.mrb[2].mxu1  ;;  %v396_v32 = vsel %vm395_vm5, %v394_v29, -inf }
 0x329   : > { %397 = vmax.xlane.f32.xlu1 %v396_v32  ;;  %v552_v33 = vpop.f32.mrb[3].mxu1 }
 0x3b6   : > { %v398_v35 = vpop.xlane.xlu1 %397 }
 0x3b7   : > { %v399_v36 = vsel %vm325_vm6, %v398_v35, 0.0 }
 0x3b8   : > { %v400_v37 = vrot.slane %v399_v36, 4 }
 0x3ba   : > { %v401_v38 = vadd.f32 %v400_v37, %v399_v36 }
 0x3bc   : > { %v402_v39 = vrot.slane %v401_v38, 2 }
 0x3be   : > { %v403_v40 = vadd.f32 %v402_v39, %v401_v38 }
 0x3c0   : > { %v404_v41 = vrot.slane %v403_v40, 1 }
 0x3c2   : > { %v405_v45 = vadd.f32 %v404_v41, %v403_v40 }
 0x3c4   : > { %v416_v47 = vmul.f32 %v415_v44, %v405_v45 }
 0x3c6   : > { %v417_v48 = vadd.f32 %v416_v47, %v413_v46  ;;  %v420_v49 = vsel %vm419_vm7, %v413_v46, %v416_v47 }
 0x3c8   : > { %v421_v50 = vsel %vm418_vm8, %v417_v48, %v420_v49 }
 0x3c9   : > { %423 = vst.msk [vmem:[%s242_s21] sm:$0x1] %vm422_vm9, %v421_v50 }
 0x3ca   : > { %717 = shalt.err (!%p714_p3)
}
 0x3cb   : > { %s718_s27 = scalar_lea.hbm %s1006_s24, 16  ;;  %s722_s29 = scalar_lea.hbm %s1054_s6, 32 }
 0x3cc   : > { %p719_p5 = scmp.ne.s32.totalorder %s1006_s24, %s718_s27  ;;  %p723_p1 = scmp.lt.u32.totalorder %s1006_s24, %s1054_s6 }
 0x3cd   : > { %p724_p12 = scmp.lt.u32.totalorder %s722_s29, %s718_s27  ;;  %p726_p0 = scmp.lt.u32.totalorder %s718_s27, %s1006_s24 }
 0x3ce   : > { %p720_p11 = pnand %p719_p5, %p927_p8 }
 0x3cf   : > { %p725_p7 = por %p724_p12, %p723_p1 }
 0x3d0   : > { %p721_p10 = pneg %p720_p11 }
 0x3d1   : > { %p727_p2 = por %p726_p0, %p725_p7 }
 0x3d3   : > { %p728_p4 = pnand %p727_p2, %p721_p10 }
 0x3d5   : > { %731 = shalt.err (!%p728_p4)
}
 0x3d6   : > { %559 = dma.vmem_to_hbm [thread:$0]  (%p927_p8), %s1008_s22, 16, %s1006_s24, %s425_s16  }
 0x3d7 PF: > { %s449_s19 = sand.u32 1, %s764_s7   ;;  %p1071_p6 = scmp.ne.s32.totalorder %s1061_s13, 0 }
 0x3d8   : > { %p1072_p9 = scmp.ge.s32.totalorder %s776_s10, 2  ;;  %s450_s20 = scalar_lea.sflag [#allocation8], %s449_s19 }
 0x3da   : > { %p570_p13 = pnand %p1072_p9, %p1071_p6 }
 0x3dc   : > { %759 = dma.done.wait (!%p570_p13), %s450_s20, 16  }
 0x3dd   : > { %761 = vsyncadd (!%p570_p13), %s450_s20, 4294967280  ;;  %p31_p3 = scmp.ge.s32.totalorder %s889_s18, 4   ;;  %s1073_s7 = smov %s768_s8 }
 0x3de   : > { %s1074_s8 = smov %s772_s9  ;;  %s1075_s9 = smov %s923_s11 }
 0x3df   : > { %s1076_s10 = smov %s889_s18  ;;  %33 = sbr.rel (!%p31_p3) target bundleno = 31 (0x1f), region = 85 }
 0x3e6   :  { %454 = vsyncpa [#allocation7], 1 }
 0x3e7   :  { %456 = vsyncpa [#allocation7 + $0x1], 1 }
 0x3e8   :  { %457 = vsyncpa [#allocation10], 1 }
 0x3e9   :  { %458 = vsyncpa [#allocation8], 1 }
 0x3ea   :  { %460 = vsyncpa [#allocation8 + $0x1], 1 }

</bundles_post_ra>
